<compile_context>
chip_gen: v6e
topology: v6e:2x2x1
jax: 0.10.0
libtpu: 0.0.40
codegen_flags: <defaults>
</compile_context>

<pallas_src>
import functools

import jax
import jax.numpy as jnp
from jax.experimental import pallas as pl
from jax.experimental.pallas import tpu as pltpu


def _round_up(v, m):
    return (v + m - 1) // m * m


def _gat_kernel(x_ref, s_ref, d_ref, dt_ref, w_ref, asrc_ref, adst_ref,
                exp_ref, b_ref, o_ref, *, neg_slope):
    """Single-shot kernel; every ref is a full array resident in VMEM.

    x_ref    : [N, Fin]   f32  node features
    s_ref    : [E, N]     bf16 one-hot of src node per edge
    d_ref    : [E, N]     bf16 one-hot of dst node per edge
    dt_ref   : [N, E]     bf16 transpose of d_ref (built in wrapper)
    w_ref    : [Fin, HCp] f32  projection weight, zero padded past H*C
    asrc_ref : [HCp, H]   f32  per-head src attention vectors (block diagonal)
    adst_ref : [HCp, H]   f32  per-head dst attention vectors (block diagonal)
    exp_ref  : [H, HCp]   f32  head -> channel-block expansion one-hot
    b_ref    : [1, HCp]   f32  bias, zero padded
    o_ref    : [N, HCp]   f32  output (lane-dense; sliced to H*C in wrapper)
    """
    # bf16 one-hots go straight to the MXU (native input dtype on v5e/v6e/v7x
    # -> one pass per matmul); f32 accumulation via preferred_element_type.
    S = s_ref[...]                      # bf16 [E, N]
    Dm = d_ref[...]                     # bf16 [E, N]
    DmT = dt_ref[...]                   # bf16 [N, E]
    # TODO(synk): drop DmT and contract over the E axis of Dm with
    # lax.dot_general once the Mosaic lowering is verified transpose-free.

    # projection: [N, HCp]  (kept f32xf32 for accuracy; small vs the ExN work)
    xw = jnp.dot(x_ref[...], w_ref[...], preferred_element_type=jnp.float32)
    xw_b = xw.astype(jnp.bfloat16)

    # per-edge gather of projected src features: [E, HCp]
    xs = jnp.dot(S, xw_b, preferred_element_type=jnp.float32)

    # attention logits, all heads batched: [E, H]
    # src term uses associativity: (S @ xw) @ A_src == S @ (xw @ A_src),
    # reusing xs and removing one [E,N] MXU pass.
    alpha_src = jnp.dot(xs, asrc_ref[...], preferred_element_type=jnp.float32)
    dst_logit = jnp.dot(xw, adst_ref[...],
                        preferred_element_type=jnp.float32)              # [N, H]
    alpha_dst = jnp.dot(Dm, dst_logit.astype(jnp.bfloat16),
                        preferred_element_type=jnp.float32)              # [E, H]
    alpha = alpha_src + alpha_dst
    alpha = jnp.where(alpha > 0, alpha, neg_slope * alpha)   # leaky relu (f32 VPU)

    # ---- segment softmax over dst, heads batched ---------------------------
    # Stability shift = per-head *global* max: softmax is invariant to any
    # constant shared by a segment, so this is mathematically identical while
    # deleting the [E,N] masked-max loop, the f32 mask and the max_e gather.
    # TODO(synk): restore a true segment max if logit ranges become unbounded
    # (risk: exp underflow for segments far below the per-head global max).
    gmax = jnp.max(alpha, axis=0, keepdims=True)              # [1, H] (XLU reduce)
    ea = jnp.exp(alpha - gmax)                                # [E, H] (EUP)

    node_sum = jnp.dot(DmT, ea.astype(jnp.bfloat16),
                       preferred_element_type=jnp.float32)    # [N, H]
    sum_e = jnp.dot(Dm, node_sum.astype(jnp.bfloat16),
                    preferred_element_type=jnp.float32)       # [E, H]
    denom = sum_e + 1e-16
    inv = pl.reciprocal(denom, approx=True)       # EUP slot (off the VALU path)
    inv = inv * (2.0 - denom * inv)               # one Newton step -> ~f32 accurate
    a_norm = ea * inv                                         # [E, H]
    # TODO(synk): attention dropout (p=0.0 / eval mode here -> identity).

    # broadcast each head's alpha over its channel block: [E, HCp]
    # (tiny matmul, K = H; deliberately left alone per the perf review)
    a_wide = jnp.dot(a_norm, exp_ref[...], preferred_element_type=jnp.float32)

    # scatter-add over dst for all heads/channels at once: [N, HCp]
    contrib = (a_wide * xs).astype(jnp.bfloat16)
    out = jnp.dot(DmT, contrib, preferred_element_type=jnp.float32)
    o_ref[...] = out + b_ref[...]


def gat_conv_pallas(x, edge_index, weight, att, bias, *,
                    heads, out_channels, negative_slope=0.2):
    N, in_channels = x.shape
    C = out_channels
    HC = heads * C
    HCp = max(128, _round_up(HC, 128))   # lane-dense output slab
    # TODO(synk): round HCp (and future contraction tiles) to 256 on v6e/v7x
    # when HC > 128 to fill the 2x256x256 MXU.

    src = edge_index[0]
    dst = edge_index[1]
    E = src.shape[0]

    # glue: dense one-hot gather/scatter matrices (bf16 is exact for 0/1).
    S = jax.nn.one_hot(src, N, dtype=jnp.bfloat16)               # [E, N]
    Dm = jax.nn.one_hot(dst, N, dtype=jnp.bfloat16)              # [E, N]
    # build the transpose directly via broadcast-compare (no XLA transpose).
    DmT = (jnp.arange(N, dtype=jnp.int32)[:, None]
           == dst[None, :].astype(jnp.int32)).astype(jnp.bfloat16)   # [N, E]

    # pad projection weight / bias out to HCp lanes
    w32 = weight.astype(jnp.float32)
    W_pad = jnp.zeros((in_channels, HCp), jnp.float32).at[:, :HC].set(w32)
    b_pad = jnp.zeros((1, HCp), jnp.float32).at[:, :HC].set(
        bias.astype(jnp.float32).reshape(1, HC))

    # block-diagonal attention matrices:
    # (xw @ A_src)[n, h] = sum_c xw[n, h*C + c] * att_src[h, c]
    att_src = att[0, :, :C].astype(jnp.float32)        # [H, C]
    att_dst = att[0, :, C:].astype(jnp.float32)        # [H, C]
    eyeH = jnp.eye(heads, dtype=jnp.float32)
    A_src = (att_src[:, :, None] * eyeH[:, None, :]).reshape(HC, heads)
    A_dst = (att_dst[:, :, None] * eyeH[:, None, :]).reshape(HC, heads)
    A_src = jnp.zeros((HCp, heads), jnp.float32).at[:HC].set(A_src)
    A_dst = jnp.zeros((HCp, heads), jnp.float32).at[:HC].set(A_dst)

    # head -> channel-block expansion one-hot: Exp[h, h*C + c] = 1
    Exp = jnp.repeat(eyeH, C, axis=1)                  # [H, HC]
    Exp = jnp.zeros((heads, HCp), jnp.float32).at[:, :HC].set(Exp)

    # VMEM budget derived from the actual buffers (capped at 64 MiB so the
    # same limit is valid on v7x; v5e's 16 MiB scoped default is too small).
    resident_bytes = (3 * E * N * 2                      # S, Dm, DmT (bf16)
                      + N * in_channels * 4              # x
                      + in_channels * HCp * 4            # W
                      + (2 * heads + heads) * HCp * 4    # A_src, A_dst, Exp
                      + HCp * 4                          # bias
                      + N * HCp * 4)                     # output
    temp_bytes = (3 * E * HCp * 4 + 2 * E * HCp * 2      # xs, a_wide, contrib + casts
                  + 8 * E * heads * 4                    # alpha/ea/sum_e/a_norm ...
                  + 4 * N * heads * 4                    # dst_logit, node_sum
                  + 3 * N * HCp * 4)                     # xw (+ bf16 copy), out
    vmem_limit = int(min(64 * 1024 * 1024,
                         max(16 * 1024 * 1024, 2 * (resident_bytes + temp_bytes))))

    kernel = functools.partial(_gat_kernel, neg_slope=negative_slope)

    vmem = pl.BlockSpec(memory_space=pltpu.MemorySpace.VMEM)
    out = pl.pallas_call(
        kernel,
        out_shape=jax.ShapeDtypeStruct((N, HCp), jnp.float32),
        in_specs=[vmem] * 9,
        out_specs=vmem,
        compiler_params=pltpu.CompilerParams(vmem_limit_bytes=vmem_limit),
    )(x.astype(jnp.float32), S, Dm, DmT, W_pad, A_src, A_dst, Exp, b_pad)
    return out[:, :HC]


def gat_conv_reference(x, edge_index, weight, att, bias, *,
                       heads, out_channels, negative_slope=0.2):
    """Pure-JAX f32 reference mirroring the PyTorch module semantics."""
    N = x.shape[0]
    C = out_channels
    xw = (x @ weight).reshape(N, heads, C)
    src, dst = edge_index[0], edge_index[1]
    x_src = xw[src]
    x_dst = xw[dst]
    a_in = jnp.concatenate([x_src, x_dst], axis=-1)      # [E, H, 2C]
    alpha = jnp.sum(a_in * att, axis=-1)                 # [E, H]
    alpha = jnp.where(alpha > 0, alpha, negative_slope * alpha)
    amax = jax.ops.segment_max(alpha, dst, num_segments=N)
    alpha = jnp.exp(alpha - amax[dst])
    asum = jax.ops.segment_sum(alpha, dst, num_segments=N)
    alpha = alpha / (asum[dst] + 1e-16)
    out = jax.ops.segment_sum(alpha[..., None] * x_src, dst, num_segments=N)
    return out.reshape(N, heads * C) + bias


if __name__ == "__main__":
    key = jax.random.PRNGKey(0)
    k_x, k_src, k_dst, k_w, k_att = jax.random.split(key, 5)

    # small, deterministic problem
    N = 12            # nodes
    E = 32            # edges
    in_channels = 16
    out_channels = 8
    heads = 2

    x = jax.random.normal(k_x, (N, in_channels), dtype=jnp.float32)
    src = jax.random.randint(k_src, (E,), 0, N, dtype=jnp.int32)
    dst = jax.random.randint(k_dst, (E,), 0, N, dtype=jnp.int32)
    edge_index = jnp.stack([src, dst], axis=0)           # [2, E]

    # deterministic xavier-uniform-style init (matches shapes of the nn.Module)
    fan_w = in_channels + heads * out_channels
    w_bound = (6.0 / fan_w) ** 0.5
    weight = jax.random.uniform(k_w, (in_channels, heads * out_channels),
                                minval=-w_bound, maxval=w_bound,
                                dtype=jnp.float32)
    fan_a = heads * 2 * out_channels + 2 * out_channels
    a_bound = (6.0 / fan_a) ** 0.5
    att = jax.random.uniform(k_att, (1, heads, 2 * out_channels),
                             minval=-a_bound, maxval=a_bound,
                             dtype=jnp.float32)
    bias = jnp.zeros((heads * out_channels,), dtype=jnp.float32)

    out = gat_conv_pallas(x, edge_index, weight, att, bias,
                          heads=heads, out_channels=out_channels,
                          negative_slope=0.2)
    out = jax.block_until_ready(out)

    ref = gat_conv_reference(x, edge_index, weight, att, bias,
                             heads=heads, out_channels=out_channels,
                             negative_slope=0.2)
    assert out.shape == (N, heads * out_channels)
    # bf16 MXU operands (deliberate, per perf review) vs. a pure-f32 reference
    # -> standard bf16-kernel tolerance.
    assert jnp.allclose(out, ref, rtol=2e-2, atol=1e-2), "mismatch vs reference"

    print("KERNEL_OK")
</pallas_src>

<mosaic_0001>
module attributes {stable_mosaic.version = 11 : i64} {
  func.func @_gat_kernel(%arg0: memref<12x16xf32, #tpu.memory_space<vmem>>, %arg1: memref<32x12xbf16, #tpu.memory_space<vmem>>, %arg2: memref<32x12xbf16, #tpu.memory_space<vmem>>, %arg3: memref<12x32xbf16, #tpu.memory_space<vmem>>, %arg4: memref<16x128xf32, #tpu.memory_space<vmem>>, %arg5: memref<128x2xf32, #tpu.memory_space<vmem>>, %arg6: memref<128x2xf32, #tpu.memory_space<vmem>>, %arg7: memref<2x128xf32, #tpu.memory_space<vmem>>, %arg8: memref<1x128xf32, #tpu.memory_space<vmem>>, %arg9: memref<12x128xf32, #tpu.memory_space<vmem>>) attributes {dimension_semantics = [], scalar_prefetch = 0 : i64, scratch_operands = 0 : i64, tpu.core_type = #tpu.core_type<tc>} {
    %c0 = arith.constant 0 : index
    %c0_0 = arith.constant 0 : index
    %0 = vector.load %arg1[%c0, %c0_0] : memref<32x12xbf16, #tpu.memory_space<vmem>>, vector<32x12xbf16>
    %c0_1 = arith.constant 0 : index
    %c0_2 = arith.constant 0 : index
    %1 = vector.load %arg2[%c0_1, %c0_2] : memref<32x12xbf16, #tpu.memory_space<vmem>>, vector<32x12xbf16>
    %c0_3 = arith.constant 0 : index
    %c0_4 = arith.constant 0 : index
    %2 = vector.load %arg3[%c0_3, %c0_4] : memref<12x32xbf16, #tpu.memory_space<vmem>>, vector<12x32xbf16>
    %c0_5 = arith.constant 0 : index
    %c0_6 = arith.constant 0 : index
    %3 = vector.load %arg0[%c0_5, %c0_6] : memref<12x16xf32, #tpu.memory_space<vmem>>, vector<12x16xf32>
    %c0_7 = arith.constant 0 : index
    %c0_8 = arith.constant 0 : index
    %4 = vector.load %arg4[%c0_7, %c0_8] : memref<16x128xf32, #tpu.memory_space<vmem>>, vector<16x128xf32>
    %cst = arith.constant dense<0.000000e+00> : vector<12x128xf32>
    %5 = tpu.matmul %3, %4, %cst {dimension_numbers = #tpu.dot_dimension_numbers<[1], [0], [0], [1], [0, 0, 1, 1], [], []>} : vector<12x16xf32>, vector<16x128xf32>, vector<12x128xf32> -> vector<12x128xf32>
    %6 = arith.truncf %5 : vector<12x128xf32> to vector<12x128xbf16>
    %cst_9 = arith.constant dense<0.000000e+00> : vector<32x128xf32>
    %7 = tpu.matmul %0, %6, %cst_9 {dimension_numbers = #tpu.dot_dimension_numbers<[1], [0], [0], [1], [0, 0, 1, 1], [], []>} : vector<32x12xbf16>, vector<12x128xbf16>, vector<32x128xf32> -> vector<32x128xf32>
    %c0_10 = arith.constant 0 : index
    %c0_11 = arith.constant 0 : index
    %8 = vector.load %arg5[%c0_10, %c0_11] : memref<128x2xf32, #tpu.memory_space<vmem>>, vector<128x2xf32>
    %cst_12 = arith.constant dense<0.000000e+00> : vector<32x2xf32>
    %9 = tpu.matmul %7, %8, %cst_12 {dimension_numbers = #tpu.dot_dimension_numbers<[1], [0], [0], [1], [0, 0, 1, 1], [], []>} : vector<32x128xf32>, vector<128x2xf32>, vector<32x2xf32> -> vector<32x2xf32>
    %c0_13 = arith.constant 0 : index
    %c0_14 = arith.constant 0 : index
    %10 = vector.load %arg6[%c0_13, %c0_14] : memref<128x2xf32, #tpu.memory_space<vmem>>, vector<128x2xf32>
    %cst_15 = arith.constant dense<0.000000e+00> : vector<12x2xf32>
    %11 = tpu.matmul %5, %10, %cst_15 {dimension_numbers = #tpu.dot_dimension_numbers<[1], [0], [0], [1], [0, 0, 1, 1], [], []>} : vector<12x128xf32>, vector<128x2xf32>, vector<12x2xf32> -> vector<12x2xf32>
    %12 = arith.truncf %11 : vector<12x2xf32> to vector<12x2xbf16>
    %cst_16 = arith.constant dense<0.000000e+00> : vector<32x2xf32>
    %13 = tpu.matmul %1, %12, %cst_16 {dimension_numbers = #tpu.dot_dimension_numbers<[1], [0], [0], [1], [0, 0, 1, 1], [], []>} : vector<32x12xbf16>, vector<12x2xbf16>, vector<32x2xf32> -> vector<32x2xf32>
    %14 = arith.addf %9, %13 : vector<32x2xf32>
    %cst_17 = arith.constant 0.000000e+00 : f32
    %15 = vector.broadcast %cst_17 : f32 to vector<32x2xf32>
    %16 = arith.cmpf ogt, %14, %15 : vector<32x2xf32>
    %cst_18 = arith.constant 2.000000e-01 : f32
    %17 = vector.broadcast %cst_18 : f32 to vector<32x2xf32>
    %18 = arith.mulf %17, %14 : vector<32x2xf32>
    %19 = arith.select %16, %14, %18 : vector<32x2xi1>, vector<32x2xf32>
    %cst_19 = arith.constant dense<0xFF800000> : vector<2xf32>
    %20 = vector.multi_reduction <maximumf>, %19, %cst_19 [0] : vector<32x2xf32> to vector<2xf32>
    %21 = vector.shape_cast %20 : vector<2xf32> to vector<1x2xf32>
    %22 = vector.broadcast %21 : vector<1x2xf32> to vector<32x2xf32>
    %23 = arith.subf %19, %22 : vector<32x2xf32>
    %24 = math.exp %23 : vector<32x2xf32>
    %25 = arith.truncf %24 : vector<32x2xf32> to vector<32x2xbf16>
    %cst_20 = arith.constant dense<0.000000e+00> : vector<12x2xf32>
    %26 = tpu.matmul %2, %25, %cst_20 {dimension_numbers = #tpu.dot_dimension_numbers<[1], [0], [0], [1], [0, 0, 1, 1], [], []>} : vector<12x32xbf16>, vector<32x2xbf16>, vector<12x2xf32> -> vector<12x2xf32>
    %27 = arith.truncf %26 : vector<12x2xf32> to vector<12x2xbf16>
    %cst_21 = arith.constant dense<0.000000e+00> : vector<32x2xf32>
    %28 = tpu.matmul %1, %27, %cst_21 {dimension_numbers = #tpu.dot_dimension_numbers<[1], [0], [0], [1], [0, 0, 1, 1], [], []>} : vector<32x12xbf16>, vector<12x2xbf16>, vector<32x2xf32> -> vector<32x2xf32>
    %cst_22 = arith.constant 1.000000e-16 : f32
    %29 = vector.broadcast %cst_22 : f32 to vector<32x2xf32>
    %30 = arith.addf %28, %29 : vector<32x2xf32>
    %31 = tpu.reciprocal %30 {approx = true} : vector<32x2xf32> -> vector<32x2xf32>
    %32 = arith.mulf %30, %31 : vector<32x2xf32>
    %cst_23 = arith.constant 2.000000e+00 : f32
    %33 = vector.broadcast %cst_23 : f32 to vector<32x2xf32>
    %34 = arith.subf %33, %32 : vector<32x2xf32>
    %35 = arith.mulf %31, %34 : vector<32x2xf32>
    %36 = arith.mulf %24, %35 : vector<32x2xf32>
    %c0_24 = arith.constant 0 : index
    %c0_25 = arith.constant 0 : index
    %37 = vector.load %arg7[%c0_24, %c0_25] : memref<2x128xf32, #tpu.memory_space<vmem>>, vector<2x128xf32>
    %cst_26 = arith.constant dense<0.000000e+00> : vector<32x128xf32>
    %38 = tpu.matmul %36, %37, %cst_26 {dimension_numbers = #tpu.dot_dimension_numbers<[1], [0], [0], [1], [0, 0, 1, 1], [], []>} : vector<32x2xf32>, vector<2x128xf32>, vector<32x128xf32> -> vector<32x128xf32>
    %39 = arith.mulf %38, %7 : vector<32x128xf32>
    %40 = arith.truncf %39 : vector<32x128xf32> to vector<32x128xbf16>
    %cst_27 = arith.constant dense<0.000000e+00> : vector<12x128xf32>
    %41 = tpu.matmul %2, %40, %cst_27 {dimension_numbers = #tpu.dot_dimension_numbers<[1], [0], [0], [1], [0, 0, 1, 1], [], []>} : vector<12x32xbf16>, vector<32x128xbf16>, vector<12x128xf32> -> vector<12x128xf32>
    %c0_28 = arith.constant 0 : index
    %c0_29 = arith.constant 0 : index
    %42 = vector.load %arg8[%c0_28, %c0_29] : memref<1x128xf32, #tpu.memory_space<vmem>>, vector<1x128xf32>
    %43 = vector.broadcast %42 : vector<1x128xf32> to vector<12x128xf32>
    %44 = arith.addf %41, %43 : vector<12x128xf32>
    %c0_30 = arith.constant 0 : index
    %c0_31 = arith.constant 0 : index
    %45 = vector.load %arg9[%c0_30, %c0_31] : memref<12x128xf32, #tpu.memory_space<vmem>>, vector<12x128xf32>
    tpu.vector_store %arg9[%c0_30, %c0_31], %44 {strides = array<i32>} : memref<12x128xf32, #tpu.memory_space<vmem>>, vector<12x128xf32>,
    return
  }
}

</mosaic_0001>

<bundles_post_ra>
// kernel: tpu_custom_call.1
= control target key start
LH: loop header
LB: loop body
LE: loop exit
PB: predicated region body
PF: predicated region fallthrough
CT: control target
= control target key end

     0   :  { %vm48_vm0 = vcmask 130048   ;;  %s1300_s0 = inlined_call_operand.vmem [shape: f32[12,16], index: 0, kind: input, shape index: {}]   ;;  %s1301_s1 = inlined_call_operand.vmem [shape: bf16[32,12], index: 1, kind: input, shape index: {}]   ;;  %s1302_s2 = inlined_call_operand.vmem [shape: bf16[32,12], index: 2, kind: input, shape index: {}]   ;;  %s1303_s3 = inlined_call_operand.vmem [shape: bf16[12,32], index: 3, kind: input, shape index: {}]   ;;  %s1304_s4 = inlined_call_operand.vmem [shape: f32[16,128], index: 4, kind: input, shape index: {}]   ;;  %s1305_s5 = inlined_call_operand.vmem [shape: f32[128,2], index: 5, kind: input, shape index: {}]   ;;  %s1306_s6 = inlined_call_operand.vmem [shape: f32[128,2], index: 6, kind: input, shape index: {}]   ;;  %s1307_s7 = inlined_call_operand.vmem [shape: f32[2,128], index: 7, kind: input, shape index: {}]   ;;  %s1308_s8 = inlined_call_operand.vmem [shape: f32[1,128], index: 8, kind: input, shape index: {}]   ;;  %s1309_s9 = inlined_call_operand.hbm [shape: f32[12,128], index: 9, kind: output, shape index: {}]  }
   0x1   :  { %v47_v0 = vld [vmem:[%s1304_s4 + $0x8] sm:$0xff]  ;;  %v46_v1 = vld [vmem:[%s1304_s4] sm:$0xff]  ;;  %v232_v3 = vld [vmem:[%s1306_s6 + $0x78] sm:$0xff] }
   0x2   :  { %v44_v2 = vld [vmem:[%s1300_s0] sm:$0xff]  ;;  %882 = vmatprep.subr.mxu1 %v47_v0  ;;  %v231_v4 = vld [vmem:[%s1306_s6 + $0x70] sm:$0xff]  ;;  %v45_v5 = vld [vmem:[%s1300_s0 + $0x8] sm:$0xf]  ;;  %895 = vmatprep.subr.mxu0 %v232_v3 }
   0x3   :  { %886 = vmatprep.mubr.msk.f32.mxu1 %vm48_vm0, %v44_v2  ;;  %883 = vmatpush3.msra.mxu1 %v47_v0  ;;  %v230_v6 = vld [vmem:[%s1306_s6 + $0x68] sm:$0xff]  ;;  %v229_v7 = vld [vmem:[%s1306_s6 + $0x60] sm:$0xff]  ;;  %v228_v8 = vld [vmem:[%s1306_s6 + $0x58] sm:$0xff] }
   0x4   :  { %884 = vmatprep.subr.mxu1 %v46_v1  ;;  %896 = vmatpush3.msra.mxu0 %v232_v3  ;;  %v227_v9 = vld [vmem:[%s1306_s6 + $0x50] sm:$0xff] }
   0x5   :  { %885 = vmatpush3.msra.mxu1 %v46_v1  ;;  %897 = vmatprep.subr.mxu0 %v231_v4 }
   0x6   :  { %887 = vmatmul.mubr.msk.f32.vlgmr.msra.gmra.mxu1 %vm48_vm0, %v45_v5  ;;  %898 = vmatpush3.msra.mxu0 %v231_v4 }
   0x7   :  { %899 = vmatprep.subr.mxu0 %v230_v6 }
   0x8   :  { %900 = vmatpush3.msra.mxu0 %v230_v6 }
   0x9   :  { %901 = vmatprep.subr.mxu0 %v229_v7 }
   0xa   :  { %902 = vmatpush3.msra.mxu0 %v229_v7 }
   0xb   :  { %14 = vsyncpa [#allocation3], 0  ;;  %903 = vmatprep.subr.mxu0 %v228_v8  ;;  %v226_v10 = vld [vmem:[%s1306_s6 + $0x48] sm:$0xff]  ;;  %v225_v11 = vld [vmem:[%s1306_s6 + $0x40] sm:$0xff]  ;;  %vm141_vm1 = vcmask 97280   ;;  %vm148_vm2 = vcmask 1045504  }
   0xc   :  { %904 = vmatpush3.msra.mxu0 %v228_v8  ;;  %v224_v12 = vld [vmem:[%s1306_s6 + $0x38] sm:$0xff]  ;;  %v223_v13 = vld [vmem:[%s1306_s6 + $0x30] sm:$0xff]  ;;  %v222_v14 = vld [vmem:[%s1306_s6 + $0x28] sm:$0xff]  ;;  %v1055_v52 = vmov 0.0   ;;  %vm1056_vm3 = vmmov 0   ;;  %vm474_vm7 = vcmask 15360  }
   0xd   :  { %905 = vmatprep.subr.mxu0 %v227_v9  ;;  %v221_v15 = vld [vmem:[%s1306_s6 + $0x20] sm:$0xff]  ;;  %v220_v16 = vld [vmem:[%s1306_s6 + $0x18] sm:$0xff]  ;;  %v219_v17 = vld [vmem:[%s1306_s6 + $0x10] sm:$0xff]  ;;  %vm507_vm9 = vcmask 261120   ;;  %vm638_vm10 = vcmask 1041408   ;;  %s1057_s17 = smov [#allocation2]  }
   0xe   :  { %906 = vmatpush3.msra.mxu0 %v227_v9  ;;  %v218_v18 = vld [vmem:[%s1306_s6 + $0x8] sm:$0xff]  ;;  %v217_v19 = vld [vmem:[%s1306_s6] sm:$0xff]  ;;  %v216_v30 = vld [vmem:[%s1305_s5 + $0x78] sm:$0xff]  ;;  %s788_s18 = sshll.u32 %s1057_s17, 4  ;;  %s789_s18 = int_to_ptr.vmem [resolvable:$true] %s788_s18 }
   0xf   :  { %907 = vmatprep.subr.mxu0 %v226_v10  ;;  %v1012_v20 = vld [vmem:[%s1301_s1] sm:$0xff]   ;;  %v1013_v25 = vld [vmem:[%s1301_s1 + $0x8] sm:$0xff]   ;;  %v215_v34 = vld [vmem:[%s1305_s5 + $0x70] sm:$0xff]  ;;  %s1033_s19 = scalar_lea.vmem %s789_s18, 256  ;;  %p1038_p1 = scmp.lt.s32.totalorder %s789_s18, %s789_s18 }
  0x10   :  { %908 = vmatpush3.msra.mxu0 %v226_v10  ;;  %891 = vmatprep.mubr.msk.bf16.mxu1 %vm141_vm1, %v1012_v20  ;;  %v1183_v26 = vld [vmem:[%s1302_s2] sm:$0xff]   ;;  %v1195_v32 = vld [vmem:[%s1302_s2 + $0x8] sm:$0xff]   ;;  %v212_v38 = vld [vmem:[%s1305_s5 + $0x58] sm:$0xff]  ;;  %p1034_p0 = scmp.ne.s32.totalorder %s789_s18, %s1033_s19  ;;  %p1039_p2 = scmp.lt.s32.totalorder %s1033_s19, %s1033_s19 }
  0x11   :  { %909 = vmatprep.subr.mxu0 %v225_v11  ;;  %v214_v36 = vld [vmem:[%s1305_s5 + $0x68] sm:$0xff]  ;;  %v213_v37 = vld [vmem:[%s1305_s5 + $0x60] sm:$0xff]  ;;  %v211_v39 = vld [vmem:[%s1305_s5 + $0x50] sm:$0xff] }
  0x12   :  { %910 = vmatpush3.msra.mxu0 %v225_v11  ;;  %v210_v40 = vld [vmem:[%s1305_s5 + $0x48] sm:$0xff]  ;;  %v209_v41 = vld [vmem:[%s1305_s5 + $0x40] sm:$0xff]  ;;  %v208_v42 = vld [vmem:[%s1305_s5 + $0x38] sm:$0xff]  ;;  %p1040_p3 = por %p1039_p2, %p1038_p1 }
  0x13   :  { %911 = vmatprep.subr.mxu0 %v224_v12  ;;  %v207_v43 = vld [vmem:[%s1305_s5 + $0x30] sm:$0xff]  ;;  %v206_v44 = vld [vmem:[%s1305_s5 + $0x28] sm:$0xff]  ;;  %v205_v45 = vld [vmem:[%s1305_s5 + $0x20] sm:$0xff] }
  0x14   :  { %912 = vmatpush3.msra.mxu0 %v224_v12  ;;  %v204_v46 = vld [vmem:[%s1305_s5 + $0x18] sm:$0xff]  ;;  %v203_v47 = vld [vmem:[%s1305_s5 + $0x10] sm:$0xff]  ;;  %v202_v48 = vld [vmem:[%s1305_s5 + $0x8] sm:$0xff]  ;;  %p1041_p4 = pnand %p1040_p3, %p1034_p0 }
  0x15   :  { %913 = vmatprep.subr.mxu0 %v223_v13  ;;  %v201_v50 = vld [vmem:[%s1305_s5] sm:$0xff] }
  0x16   :  { %914 = vmatpush3.msra.mxu0 %v223_v13 }
  0x17   :  { %915 = vmatprep.subr.mxu0 %v222_v14 }
  0x18   :  { %916 = vmatpush3.msra.mxu0 %v222_v14 }
  0x19   :  { %917 = vmatprep.subr.mxu0 %v221_v15 }
  0x1a   :  { %918 = vmatpush3.msra.mxu0 %v221_v15 }
  0x1b   :  { %919 = vmatprep.subr.mxu0 %v220_v16 }
  0x1c   :  { %920 = vmatpush3.msra.mxu0 %v220_v16 }
  0x1d   :  { %921 = vmatprep.subr.mxu0 %v219_v17 }
  0x1e   :  { %922 = vmatpush3.msra.mxu0 %v219_v17 }
  0x1f   :  { %923 = vmatprep.subr.mxu0 %v218_v18 }
  0x20   :  { %924 = vmatpush3.msra.mxu0 %v218_v18 }
  0x21   :  { %925 = vmatprep.subr.mxu0 %v217_v19 }
  0x22   :  { %926 = vmatpush3.msra.mxu0 %v217_v19 }
  0x23   :  { %974 = vmatprep.subr.bf16.mxu0 %v1055_v52 }
  0xc6   :  { %v888_v21 = vpop.f32.mrf.mxu1 }
  0xc8   :  { %v121_v22 = vpop.f32.mrf.mxu1 }
  0xc9   :  { %v130_v23 = vpack.c.bf16 %v888_v21, %v121_v22  ;;  %927 = vmatprep.mubr.f32.mxu0 %v121_v22 }
  0xca   :  { %928 = vmatmul.mubr.f32.vlgmr.msra.gmra.mxu0 %v888_v21 }
  0xcb   :  { %1004 = vmatprep.subr.msk.bf16.mxu1 %vm148_vm2, %v130_v23  ;;  %v150_v24 = vsel %vm148_vm2, %v130_v23, 0  ;;  %978 = vmatprep.mubr.msk.bf16.mxu0 %vm1056_vm3, %v1055_v52 }
  0xcc   :  { %890 = vmatpush3.bf16.msra.mxu1 %v150_v24 }
  0xcf   :  { %892 = vmatmul.mubr.msk.bf16.vlgmr.msra.gmra.mxu1 %vm141_vm1, %v1013_v25 }
  0xd0   :  { %932 = vmatprep.mubr.msk.bf16.mxu1 %vm141_vm1, %v1183_v26 }
 0x18a   :  { %v929_v27 = vpop.f32.mrf.mxu0 }
 0x18c   :  { %v299_v28 = vpop.f32.mrf.mxu0 }
 0x18d   :  { %v308_v29 = vpack.c.bf16 %v929_v27, %v299_v28 }
 0x18f   :  { %v326_v31 = vsel %vm148_vm2, %v308_v29, 0  ;;  %1005 = vmatprep.subr.msk.bf16.mxu1 %vm148_vm2, %v308_v29  ;;  %v1197_v33 = vpop.f32.mrf.mxu1 }
 0x190   :  { %931 = vmatpush3.bf16.msra.mxu1 %v326_v31 }
 0x191   :  { %936 = vmatprep.subr.mxu1 %v216_v30  ;;  %v1204_v35 = vpop.f32.mrf.mxu1 }
 0x193   :  { %933 = vmatmul.mubr.msk.bf16.vlgmr.msra.gmra.mxu1 %vm141_vm1, %v1195_v32  ;;  %v1246_v49 = vpop.f32.mrf.mxu1 }
 0x194   :  { %937 = vmatpush3.msra.mxu1 %v216_v30  ;;  %968 = vmatprep.mubr.f32.mxu1 %v1204_v35 }
 0x195   :  { %938 = vmatprep.subr.mxu1 %v215_v34  ;;  %v1251_v51 = vpop.f32.mrf.mxu1 }
 0x196   :  { %939 = vmatpush3.msra.mxu1 %v215_v34 }
 0x197   :  { %940 = vmatprep.subr.mxu1 %v214_v36 }
 0x198   :  { %941 = vmatpush3.msra.mxu1 %v214_v36 }
 0x199   :  { %942 = vmatprep.subr.mxu1 %v213_v37 }
 0x19a   :  { %943 = vmatpush3.msra.mxu1 %v213_v37 }
 0x19b   :  { %944 = vmatprep.subr.mxu1 %v212_v38 }
 0x19c   :  { %945 = vmatpush3.msra.mxu1 %v212_v38 }
 0x19d   :  { %946 = vmatprep.subr.mxu1 %v211_v39 }
 0x19e   :  { %947 = vmatpush3.msra.mxu1 %v211_v39 }
 0x19f   :  { %948 = vmatprep.subr.mxu1 %v210_v40 }
 0x1a0   :  { %949 = vmatpush3.msra.mxu1 %v210_v40  ;;  %v1267_v40 = vld [vmem:[%s1303_s3] sm:$0x3f]  }
 0x1a1   :  { %950 = vmatprep.subr.mxu1 %v209_v41 }
 0x1a2   :  { %951 = vmatpush3.msra.mxu1 %v209_v41 }
 0x1a3   :  { %952 = vmatprep.subr.mxu1 %v208_v42 }
 0x1a4   :  { %953 = vmatpush3.msra.mxu1 %v208_v42 }
 0x1a5   :  { %954 = vmatprep.subr.mxu1 %v207_v43 }
 0x1a6   :  { %955 = vmatpush3.msra.mxu1 %v207_v43 }
 0x1a7   :  { %956 = vmatprep.subr.mxu1 %v206_v44 }
 0x1a8   :  { %957 = vmatpush3.msra.mxu1 %v206_v44 }
 0x1a9   :  { %958 = vmatprep.subr.mxu1 %v205_v45 }
 0x1aa   :  { %959 = vmatpush3.msra.mxu1 %v205_v45 }
 0x1ab   :  { %960 = vmatprep.subr.mxu1 %v204_v46 }
 0x1ac   :  { %961 = vmatpush3.msra.mxu1 %v204_v46 }
 0x1ad   :  { %962 = vmatprep.subr.mxu1 %v203_v47 }
 0x1ae   :  { %963 = vmatpush3.msra.mxu1 %v203_v47 }
 0x1af   :  { %964 = vmatprep.subr.mxu1 %v202_v48 }
 0x1b0   :  { %965 = vmatpush3.msra.mxu1 %v202_v48 }
 0x1b1   :  { %966 = vmatprep.subr.mxu1 %v201_v50 }
 0x1b2   :  { %967 = vmatpush3.msra.mxu1 %v201_v50 }
 0x1b3   :  { %969 = vmatmul.mubr.f32.vlgmr.msra.gmra.mxu1 %v1251_v51 }
 0x1b4   :  { %971 = vmatprep.mubr.f32.mxu1 %v1197_v33 }
 0x1b7   :  { %972 = vmatmul.mubr.f32.gmra.mxu1 %v1246_v49 }
 0x253   :  { %v934_v53 = vpop.f32.mrf.mxu1 }
 0x255   :  { %v362_v54 = vpop.f32.mrf.mxu1 }
 0x257   :  { %v935_v55 = vpop.f32.mrf.mxu1 }
 0x259   :  { %v365_v56 = vpop.f32.mrf.mxu1 }
 0x273   :  { %v970_v57 = vpop.f32.mrf.mxu1 }
 0x274   :  { %v449_v58 = vadd.f32 %v970_v57, %v365_v56 }
 0x275   :  { %v443_v59 = vpop.f32.mrf.mxu1 }
 0x276   :  { %v444_v60 = vadd.f32 %v443_v59, %v362_v54  ;;  %v467_v62 = vmul.f32 0.2, %v449_v58  ;;  %vm463_vm5 = vcmp.gt.f32.partialorder %v449_v58, 0.0 }
 0x277   :  { %v973_v61 = vpop.f32.mrf.mxu1 }
 0x278   :  { %vm462_vm4 = vcmp.gt.f32.partialorder %v444_v60, 0.0  ;;  %v466_v63 = vmul.f32 0.2, %v444_v60  ;;  %v459_v0 = vadd.f32 %v973_v61, %v935_v55  ;;  %v471_v5 = vsel %vm463_vm5, %v449_v58, %v467_v62 }
 0x279   :  { %v453_v1 = vpop.f32.mrf.mxu1  ;;  %v476_v10 = vsel %vm474_vm7, %v471_v5, -inf }
 0x27a   :  { %v470_v2 = vsel %vm462_vm4, %v444_v60, %v466_v63  ;;  %vm465_vm6 = vcmp.gt.f32.partialorder %v459_v0, 0.0  ;;  %v469_v3 = vmul.f32 0.2, %v459_v0  ;;  %v454_v4 = vadd.f32 %v934_v53, %v453_v1 }
 0x27b   :  { %v475_v8 = vsel %vm474_vm7, %v470_v2, -inf }
 0x27c   :  { %v473_v6 = vsel %vm465_vm6, %v459_v0, %v469_v3  ;;  %vm464_vm8 = vcmp.gt.f32.partialorder %v454_v4, 0.0  ;;  %v468_v7 = vmul.f32 0.2, %v454_v4  ;;  %v479_v13 = vmax.f32 %v475_v8, %v476_v10 }
 0x27d   :  { %v478_v11 = vsel %vm474_vm7, %v473_v6, -inf }
 0x27e   :  { %v472_v9 = vsel %vm464_vm8, %v454_v4, %v468_v7 }
 0x27f   :  { %v477_v12 = vsel %vm474_vm7, %v472_v9, -inf }
 0x280   :  { %v480_v14 = vmax.f32 %v477_v12, %v478_v11 }
 0x282   :  { %v481_v15 = vmax.f32 %v479_v13, %v480_v14 }
 0x284   :  { %v482_v16 = vrot.slane %v481_v15, 4 }
 0x286   :  { %v483_v17 = vmax.f32 %v481_v15, %v482_v16 }
 0x288   :  { %v484_v18 = vrot.slane %v483_v17, 2 }
 0x28a   :  { %v485_v19 = vmax.f32 %v483_v17, %v484_v18 }
 0x28c   :  { %v486_v20 = vrot.slane %v485_v19, 1 }
 0x28e   :  { %v487_v21 = vmax.f32 %v485_v19, %v486_v20 }
 0x290   :  { %v488_v22 = vsub.f32 %v470_v2, %v487_v21  ;;  %v489_v23 = vsub.f32 %v471_v5, %v487_v21  ;;  %v490_v24 = vsub.f32 %v472_v9, %v487_v21  ;;  %v491_v25 = vsub.f32 %v473_v6, %v487_v21 }
 0x292   :  { %v496_v27 = vmul.f32 1.442695, %v490_v24  ;;  %v498_v28 = vmul.f32 1.442695, %v491_v25  ;;  %v492_v29 = vmul.f32 1.442695, %v488_v22 }
 0x293   :  { %v494_v30 = vmul.f32 1.442695, %v489_v23  ;;  %v818_v23 = vld [vmem:[%s1308_s8] ss:$0 sm:$0xff] }
 0x294   :  { %1017 = vpow2.f32 %v496_v27 }
 0x295   :  { %1019 = vpow2.f32 %v498_v28 }
 0x296   :  { %1021 = vpow2.f32 %v492_v29 }
 0x297   :  { %1023 = vpow2.f32 %v494_v30 }
 0x2a1   :  { %v1018_v31 = vpop.eup %1017 }
 0x2a2   :  { %v1020_v34 = vpop.eup %1019 }
 0x2a3   :  { %v1022_v36 = vpop.eup %1021  ;;  %v501_v37 = vpack.c.bf16 %v1020_v34, %v1018_v31 }
 0x2a4   :  { %v1024_v38 = vpop.eup %1023 }
 0x2a5   :  { %975 = vmatpush3.bf16.msra.mxu0 %v501_v37  ;;  %v500_v39 = vpack.c.bf16 %v1024_v38, %v1022_v36 }
 0x2a6   :  { %976 = vmatprep.subr.bf16.mxu0 %v1055_v52 }
 0x2a9   :  { %977 = vmatpush3.bf16.msra.mxu0 %v500_v39 }
 0x2ac   :  { %979 = vmatmul.mubr.msk.bf16.vlgmr.msra.gmra.mxu0 %vm507_vm9, %v1267_v40 }
 0x2ad   :  { %984 = vmatprep.mubr.msk.bf16.mxu0 %vm141_vm1, %v1183_v26  ;;  %v625_v26 = vld [vmem:[%s1307_s7] sm:$0x3] }
 0x2ae   :  { %988 = vmatprep.subr.msk.mxu1 %vm638_vm10, %v625_v26 }
 0x2af   :  { %989 = vmatpush3.msk.msra.mxu1 %vm638_vm10, %v625_v26 }
 0x36c   :  { %v545_v41 = vpop.f32.mrf.mxu0 }
 0x36e   :  { %v980_v42 = vpop.f32.mrf.mxu0 }
 0x370   :  { %v548_v43 = vpop.f32.mrf.mxu0 }
 0x371   :  { %v552_v44 = vpack.c.bf16 %v548_v43, %v545_v41 }
 0x372   :  { %v981_v45 = vpop.f32.mrf.mxu0 }
 0x373   :  { %v554_v46 = vsel %vm148_vm2, %v552_v44, 0  ;;  %1006 = vmatprep.subr.msk.bf16.mxu0 %vm148_vm2, %v552_v44 }
 0x374   :  { %983 = vmatpush3.bf16.msra.mxu0 %v554_v46 }
 0x375   :  { %996 = vmatprep.subr.bf16.mxu0 %v1055_v52 }
 0x377   :  { %985 = vmatmul.mubr.msk.bf16.vlgmr.msra.gmra.mxu0 %vm141_vm1, %v1195_v32 }
 0x378   :  { %1000 = vmatprep.mubr.msk.bf16.mxu0 %vm1056_vm3, %v1055_v52 }
 0x437   :  { %v986_v47 = vpop.f32.mrf.mxu0 }
 0x438   :  { %v599_v48 = vadd.f32 1e-16, %v986_v47 }
 0x439   :  { %v590_v50 = vpop.f32.mrf.mxu0 }
 0x43a   :  { %1025 = vrcp.f32 %v599_v48  ;;  %v591_v53 = vadd.f32 1e-16, %v590_v50 }
 0x43b   :  { %v987_v54 = vpop.f32.mrf.mxu0 }
 0x43c   :  { %1027 = vrcp.f32 %v591_v53  ;;  %v602_v55 = vadd.f32 1e-16, %v987_v54 }
 0x43d   :  { %v593_v56 = vpop.f32.mrf.mxu0 }
 0x43e   :  { %1029 = vrcp.f32 %v602_v55  ;;  %v594_v32 = vadd.f32 1e-16, %v593_v56 }
 0x440   :  { %1031 = vrcp.f32 %v594_v32 }
 0x447   :  { %v1026_v57 = vpop.eup %1025 }
 0x448   :  { %v611_v59 = vmul.f32 %v1026_v57, %v599_v48 }
 0x449   :  { %v1028_v58 = vpop.eup %1027 }
 0x44a   :  { %v609_v60 = vmul.f32 %v1028_v58, %v591_v53  ;;  %v615_v1 = vsub.f32 2.0, %v611_v59 }
 0x44b   :  { %v1030_v61 = vpop.eup %1029 }
 0x44c   :  { %v613_v62 = vsub.f32 2.0, %v609_v60  ;;  %v612_v63 = vmul.f32 %v1030_v61, %v602_v55  ;;  %v619_v7 = vmul.f32 %v1026_v57, %v615_v1 }
 0x44d   :  { %v1032_v0 = vpop.eup %1031 }
 0x44e   :  { %v617_v2 = vmul.f32 %v1028_v58, %v613_v62  ;;  %v610_v3 = vmul.f32 %v1032_v0, %v594_v32  ;;  %v616_v5 = vsub.f32 2.0, %v612_v63  ;;  %v623_v11 = vmul.f32 %v1018_v31, %v619_v7 }
 0x450   :  { %v621_v4 = vmul.f32 %v1022_v36, %v617_v2  ;;  %v614_v6 = vsub.f32 2.0, %v610_v3  ;;  %v620_v9 = vmul.f32 %v1030_v61, %v616_v5 }
 0x452   :  { %v618_v8 = vmul.f32 %v1032_v0, %v614_v6  ;;  %990 = vmatprep.mubr.msk.f32.mxu1 %vm474_vm7, %v621_v4  ;;  %v624_v12 = vmul.f32 %v1020_v34, %v620_v9 }
 0x454   :  { %v622_v10 = vmul.f32 %v1024_v38, %v618_v8 }
 0x456   :  { %991 = vmatmul.mubr.msk.f32.vlgmr.msra.gmra.mxu1 %vm474_vm7, %v622_v10 }
 0x457   :  { %993 = vmatprep.mubr.msk.f32.mxu1 %vm474_vm7, %v623_v11 }
 0x45a   :  { %994 = vmatmul.mubr.msk.f32.gmra.mxu1 %vm474_vm7, %v624_v12 }
 0x516   :  { %v992_v13 = vpop.f32.mrf.mxu1 }
 0x517   :  { %v728_v21 = vmul.f32 %v992_v13, %v1251_v51 }
 0x518   :  { %v708_v14 = vpop.f32.mrf.mxu1 }
 0x519   :  { %v727_v19 = vmul.f32 %v708_v14, %v1204_v35 }
 0x51a   :  { %v995_v15 = vpop.f32.mrf.mxu1 }
 0x51b   :  { %v730_v17 = vmul.f32 %v995_v15, %v1246_v49  ;;  %v731_v22 = vpack.c.bf16 %v728_v21, %v727_v19 }
 0x51c   :  { %v718_v16 = vpop.f32.mrf.mxu1 }
 0x51d   :  { %v729_v18 = vmul.f32 %v1197_v33, %v718_v16 }
 0x51f   :  { %v732_v20 = vpack.c.bf16 %v730_v17, %v729_v18 }
 0x521   :  { %997 = vmatpush3.bf16.msra.mxu0 %v732_v20 }
 0x522   :  { %998 = vmatprep.subr.bf16.mxu0 %v1055_v52 }
 0x525   :  { %999 = vmatpush3.bf16.msra.mxu0 %v731_v22 }
 0x528   :  { %1001 = vmatmul.mubr.msk.bf16.vlgmr.msra.gmra.mxu0 %vm507_vm9, %v1267_v40 }
 0x5e8   :  { %v774_v49 = vpop.f32.mrf.mxu0 }
 0x5e9   :  { %v775_v24 = vadd.f32 %v818_v23, %v774_v49 }
 0x5ea   :  { %v1002_v33 = vpop.f32.mrf.mxu0 }
 0x5eb   :  { %781 = vst [vmem:[#allocation2] sm:$0xff] %v775_v24 }
 0x5ec   :  { %v777_v35 = vpop.f32.mrf.mxu0 }
 0x5ed   :  { %v778_v51 = vadd.f32 %v818_v23, %v777_v35 }
 0x5ee   :  { %v1003_v25 = vpop.f32.mrf.mxu0 }
 0x5ef   :  { %782 = vst [vmem:[#allocation2 + $0x8] sm:$0xf] %v778_v51 }
 0x5f0   :  { %1044 = shalt.err (!%p1041_p4)
}
 0x5f1   :  { %s1058_s20 = smov 128   ;;  %s1059_s8 = smov 8  }
 0x5f2   :  { %794 = dma.vmem_to_hbm [thread:$0]  %s789_s18, 256, %s1309_s9, [#allocation3], %s1058_s20, %s1058_s20, %s1059_s8  }
 0x5f3   :  { %1053 = dma.done.wait [#allocation3], 256  }
 0x5f4   :  { %1054 = vsyncadd [#allocation3], 4294967040 }
 0x5f5   :  { %798 = vsyncpa [#allocation3], 1 }

</bundles_post_ra>
